<compile_context>
chip_gen: v5e
topology: v5e:2x2
jax: 0.10.0
libtpu: 0.0.40
codegen_flags: <defaults>
</compile_context>

<pallas_src>
import functools

import jax
import jax.numpy as jnp
from jax import lax
from jax.experimental import pallas as pl
from jax.experimental.pallas import tpu as pltpu

IN_EPS = 1e-3   # InstanceNorm2d eps given in the module
BN_EPS = 1e-5   # BatchNorm2d default eps


# --------------------------------------------------------------------------- #
# Tiling helpers                                                               #
# --------------------------------------------------------------------------- #
def _vmem_budget_bytes():
    """Per-generation VMEM budget for tile derivation / vmem_limit_bytes."""
    default = 32 * 1024 * 1024  # safe everywhere (v7x physical VMEM is 64 MiB/TC)
    try:
        cap = int(pltpu.get_tpu_info().vmem_capacity_bytes)
        # ~3/4 of physical, capped at 96 MiB (v5e/v6e have 128 MiB).
        return max(default, min(cap * 3 // 4, 96 * 1024 * 1024))
    except Exception:
        return default


def _lane_tile(hw, max_elems):
    """Largest divisor of hw that is a multiple of 128 and <= max_elems.

    Falls back to the full extent when hw is not a multiple of 128 (full-dim
    blocks are always legal)."""
    if hw % 128 != 0:
        return hw
    max_elems = max(int(max_elems), 128)
    q = hw // 128
    best = 128
    d = 1
    while d * d <= q:
        if q % d == 0:
            for m in (d, q // d):
                t = m * 128
                if best < t <= max_elems:
                    best = t
        d += 1
    return best


def _channel_block(c):
    """Channel block for pass-1 megacore parallelism; full C when small."""
    if c <= 256 or c % 8 != 0:
        return c
    q = c // 8
    best = c
    for d in range(1, q + 1):
        if q % d == 0 and d * 8 <= 256:
            best = d * 8
    return best


# --------------------------------------------------------------------------- #
# Fused single-kernel path (whole activation resident in VMEM)                 #
# --------------------------------------------------------------------------- #
def fused_kernel(x_ref, gamma_ref, beta_ref, w_ref, b_ref, o_ref):
    # x_ref: (N, C, HW) resident; gamma/beta: (1, C, 1); w: (CO, C); b: (1, CO, 1)
    x = x_ref[...].astype(jnp.float32)
    mean_in = jnp.mean(x, axis=-1, keepdims=True)                     # (N, C, 1)
    xc = x - mean_in
    var_in = jnp.mean(xc * xc, axis=-1, keepdims=True)                # centred (x resident)
    inv_in = lax.rsqrt(var_in + IN_EPS)
    # Closed-form BN (training mode) stats of the IN output:
    #   mean_bn == 0, var_bn(c) = mean_n[ var_in / (var_in + IN_EPS) ].
    var_bn = jnp.mean(var_in * inv_in * inv_in, axis=0, keepdims=True)
    inv_bn = lax.rsqrt(var_bn + BN_EPS)
    scale = gamma_ref[...].astype(jnp.float32) * inv_in * inv_bn      # (N, C, 1)
    shift = beta_ref[...].astype(jnp.float32)
    a = jnp.maximum(xc * scale + shift, 0.0)                          # IN+BN+ReLU
    # 1x1 conv: contract channels (tiny C/CO -> MXU utilisation irrelevant,
    # kernel is HBM-bound).
    y = jnp.einsum("oc,nct->not", w_ref[...].astype(jnp.float32), a,
                   preferred_element_type=jnp.float32)
    o_ref[...] = (y + b_ref[...]).astype(o_ref.dtype)


# --------------------------------------------------------------------------- #
# Pass 1: fused InstanceNorm + BatchNorm statistics -> per-(n, c) scale/shift  #
# --------------------------------------------------------------------------- #
def stats_kernel(x_ref, gamma_ref, beta_ref, scale_ref, shift_ref,
                 sum_ref, ssq_ref, *, hw):
    # grid = (C//cblk [parallel], HW//st [arbitrary, reduction])
    # x_ref: (N, cblk, st); gamma/beta: (1, cblk, 1); outputs/scratch: (N, cblk, 1)
    j = pl.program_id(1)

    @pl.when(j == 0)
    def _init():
        sum_ref[...] = jnp.zeros_like(sum_ref)
        ssq_ref[...] = jnp.zeros_like(ssq_ref)

    x = x_ref[...].astype(jnp.float32)
    sum_ref[...] += jnp.sum(x, axis=-1, keepdims=True)
    ssq_ref[...] += jnp.sum(x * x, axis=-1, keepdims=True)

    @pl.when(j == pl.num_programs(1) - 1)
    def _finalize():
        inv_hw = 1.0 / hw
        mean_in = sum_ref[...] * inv_hw                                   # (N, cblk, 1)
        var_in = jnp.maximum(ssq_ref[...] * inv_hw - mean_in * mean_in, 0.0)
        inv_in = lax.rsqrt(var_in + IN_EPS)
        var_bn = jnp.mean(var_in * inv_in * inv_in, axis=0, keepdims=True)
        inv_bn = lax.rsqrt(var_bn + BN_EPS)
        scale = gamma_ref[...].astype(jnp.float32) * inv_in * inv_bn      # (N, cblk, 1)
        scale_ref[...] = scale
        shift_ref[...] = beta_ref[...].astype(jnp.float32) - mean_in * scale


# --------------------------------------------------------------------------- #
# Pass 2: fused affine (IN+BN) + ReLU + 1x1 conv, streamed over (n, HW tiles)  #
# --------------------------------------------------------------------------- #
def affine_relu_conv_kernel(x_ref, scale_ref, shift_ref, w_ref, b_ref, o_ref):
    # x_ref: (1, C, ct); scale/shift: (1, C, 1); w: (CO, C); b: (1, CO, 1); o: (1, CO, ct)
    x = x_ref[...].astype(jnp.float32)
    a = jnp.maximum(x * scale_ref[...] + shift_ref[...], 0.0)
    y = jnp.dot(w_ref[...], a[0], preferred_element_type=jnp.float32)   # (CO, ct)
    o_ref[0] = (y + b_ref[0]).astype(o_ref.dtype)


# --------------------------------------------------------------------------- #
# Wrapper                                                                      #
# --------------------------------------------------------------------------- #
def down_forward(x_nchw, gamma, beta, w, b, *, force_two_pass=False):
    """Pallas implementation of Down.forward. x_nchw: (N, C, H, W)."""
    N, C, H, W = x_nchw.shape
    CO = w.shape[0]
    HW = H * W

    # Pure reshapes only -- no transposes, no extra HBM round trips, no wrapper cast.
    x3 = x_nchw.reshape(N, C, HW)
    gamma3 = gamma.reshape(1, C, 1).astype(jnp.float32)
    beta3 = beta.reshape(1, C, 1).astype(jnp.float32)
    w2 = w.reshape(CO, C).astype(jnp.float32)
    b3 = b.reshape(1, CO, 1).astype(jnp.float32)

    itemsize = x3.dtype.itemsize
    vmem_budget = _vmem_budget_bytes()

    # ---------------- Fused path: whole activation resident in VMEM ----------
    fused_f32_temps = 4 * N * HW * (2 * C + CO)         # x_f32 + a + y temporaries
    fused_io = 2 * itemsize * N * HW * (C + CO)         # (conservative) in + out buffers
    use_fused = (not force_two_pass) and (fused_f32_temps + fused_io) <= int(vmem_budget * 0.6)

    if use_fused:
        out3 = pl.pallas_call(
            fused_kernel,
            out_shape=jax.ShapeDtypeStruct((N, CO, HW), x3.dtype),
            grid=(1,),
            in_specs=[
                pl.BlockSpec((N, C, HW), lambda i: (0, 0, 0)),
                pl.BlockSpec((1, C, 1), lambda i: (0, 0, 0)),
                pl.BlockSpec((1, C, 1), lambda i: (0, 0, 0)),
                pl.BlockSpec((CO, C), lambda i: (0, 0)),
                pl.BlockSpec((1, CO, 1), lambda i: (0, 0, 0)),
            ],
            out_specs=pl.BlockSpec((N, CO, HW), lambda i: (0, 0, 0)),
            compiler_params=pltpu.CompilerParams(vmem_limit_bytes=vmem_budget),
            cost_estimate=pl.CostEstimate(
                flops=2 * N * HW * CO * C + 8 * N * C * HW,
                transcendentals=2 * N * C,
                bytes_accessed=itemsize * N * HW * (C + CO)),
        )(x3, gamma3, beta3, w2, b3)
        return out3.reshape(N, CO, H, W)

    # ---------------- Two-pass path (activation does not fit in VMEM) --------
    # Pass 1: statistics (reduction over HW; tiny (N, C, 1) outputs).
    cblk = _channel_block(C)
    st_cap = (vmem_budget // 3) // max(2 * itemsize * N * cblk, 1)
    st = _lane_tile(HW, min(max(st_cap, 128), 32768))

    scale, shift = pl.pallas_call(
        functools.partial(stats_kernel, hw=HW),
        out_shape=(jax.ShapeDtypeStruct((N, C, 1), jnp.float32),
                   jax.ShapeDtypeStruct((N, C, 1), jnp.float32)),
        grid=(C // cblk, HW // st),
        in_specs=[
            pl.BlockSpec((N, cblk, st), lambda c, j: (0, c, j)),
            pl.BlockSpec((1, cblk, 1), lambda c, j: (0, c, 0)),
            pl.BlockSpec((1, cblk, 1), lambda c, j: (0, c, 0)),
        ],
        out_specs=(pl.BlockSpec((N, cblk, 1), lambda c, j: (0, c, 0)),
                   pl.BlockSpec((N, cblk, 1), lambda c, j: (0, c, 0))),
        scratch_shapes=[pltpu.VMEM((N, cblk, 1), jnp.float32),
                        pltpu.VMEM((N, cblk, 1), jnp.float32)],
        compiler_params=pltpu.CompilerParams(
            dimension_semantics=("parallel", "arbitrary"),
            vmem_limit_bytes=vmem_budget),
        cost_estimate=pl.CostEstimate(
            flops=3 * N * C * HW,
            transcendentals=2 * N * C,
            bytes_accessed=itemsize * N * C * HW),
    )(x3, gamma3, beta3)

    # Pass 2: normalize + ReLU + 1x1 conv, fully parallel grid, fat lane tiles.
    per_lane_bytes = 2 * itemsize * (C + CO) + 4 * (C + CO)   # I/O double-buffers + f32 temps
    ct_cap = (vmem_budget // 2) // max(per_lane_bytes, 1)
    ct = _lane_tile(HW, min(max(ct_cap, 128), 32768))

    out3 = pl.pallas_call(
        affine_relu_conv_kernel,
        out_shape=jax.ShapeDtypeStruct((N, CO, HW), x3.dtype),
        grid=(N, HW // ct),
        in_specs=[
            pl.BlockSpec((1, C, ct), lambda n, t: (n, 0, t)),
            pl.BlockSpec((1, C, 1), lambda n, t: (n, 0, 0)),
            pl.BlockSpec((1, C, 1), lambda n, t: (n, 0, 0)),
            pl.BlockSpec((CO, C), lambda n, t: (0, 0)),
            pl.BlockSpec((1, CO, 1), lambda n, t: (0, 0, 0)),
        ],
        out_specs=pl.BlockSpec((1, CO, ct), lambda n, t: (n, 0, t)),
        compiler_params=pltpu.CompilerParams(
            dimension_semantics=("parallel", "parallel"),
            vmem_limit_bytes=vmem_budget),
        cost_estimate=pl.CostEstimate(
            flops=2 * N * HW * CO * C + 3 * N * C * HW,
            transcendentals=0,
            bytes_accessed=itemsize * N * HW * (C + CO)),
    )(x3, scale, shift, w2, b3)

    return out3.reshape(N, CO, H, W)


def down_reference(x_nchw, gamma, beta, w, b):
    """Pure-JAX reference of the same forward (for a sanity check)."""
    N, C, H, W = x_nchw.shape
    x = x_nchw.astype(jnp.float32)
    m = jnp.mean(x, axis=(2, 3), keepdims=True)
    v = jnp.mean((x - m) ** 2, axis=(2, 3), keepdims=True)
    xin = (x - m) * lax.rsqrt(v + IN_EPS)
    mb = jnp.mean(xin, axis=(0, 2, 3), keepdims=True)
    vb = jnp.mean((xin - mb) ** 2, axis=(0, 2, 3), keepdims=True)
    xbn = (xin - mb) * lax.rsqrt(vb + BN_EPS)
    xbn = xbn * gamma.reshape(1, C, 1, 1) + beta.reshape(1, C, 1, 1)
    a = jnp.maximum(xbn, 0.0)
    y = jnp.einsum("oc,nchw->nohw", w.reshape(w.shape[0], C), a) + b.reshape(1, -1, 1, 1)
    return y


if __name__ == "__main__":
    # Small shapes consistent with the module.
    N, C, H, W = 2, 4, 16, 16
    CO = 8

    key = jax.random.PRNGKey(0)
    kx, kg, kb, kw, kbias = jax.random.split(key, 5)

    x = jax.random.normal(kx, (N, C, H, W), dtype=jnp.float32)
    gamma = 1.0 + 0.1 * jax.random.normal(kg, (C,), dtype=jnp.float32)
    beta = 0.1 * jax.random.normal(kb, (C,), dtype=jnp.float32)
    w = jax.random.normal(kw, (CO, C), dtype=jnp.float32) * 0.5
    b = 0.1 * jax.random.normal(kbias, (CO,), dtype=jnp.float32)

    ref = jax.block_until_ready(down_reference(x, gamma, beta, w, b))

    # Fused (resident-x) path -- selected automatically for shapes that fit VMEM.
    out_fused = jax.block_until_ready(down_forward(x, gamma, beta, w, b))
    assert out_fused.shape == (N, CO, H, W), out_fused.shape
    assert jnp.allclose(out_fused, ref, atol=1e-4, rtol=1e-4), float(
        jnp.max(jnp.abs(out_fused - ref)))

    # Two-pass streaming path (used for large shapes) -- exercised explicitly.
    out_2p = jax.block_until_ready(
        down_forward(x, gamma, beta, w, b, force_two_pass=True))
    assert out_2p.shape == (N, CO, H, W), out_2p.shape
    assert jnp.allclose(out_2p, ref, atol=1e-4, rtol=1e-4), float(
        jnp.max(jnp.abs(out_2p - ref)))

    print("KERNEL_OK")
</pallas_src>

<mosaic_0001>
module attributes {stable_mosaic.version = 11 : i64} {
  func.func @fused_kernel(%arg0: i32, %arg1: memref<2x4x256xf32, #tpu.memory_space<vmem>>, %arg2: memref<1x4x1xf32, #tpu.memory_space<vmem>>, %arg3: memref<1x4x1xf32, #tpu.memory_space<vmem>>, %arg4: memref<8x4xf32, #tpu.memory_space<vmem>>, %arg5: memref<1x8x1xf32, #tpu.memory_space<vmem>>, %arg6: memref<2x8x256xf32, #tpu.memory_space<vmem>>) attributes {dimension_semantics = [#tpu.dimension_semantics<arbitrary>], iteration_bounds = array<i64: 1>, scalar_prefetch = 0 : i64, scratch_operands = 0 : i64, tpu.core_type = #tpu.core_type<tc>, window_params = [{pipeline_mode = #tpu.pipeline_mode<synchronous>, transform_indices = @transform_0, window_bounds = array<i64: 2, 4, 256>}, {pipeline_mode = #tpu.pipeline_mode<synchronous>, transform_indices = @transform_1, window_bounds = array<i64: 1, 4, 1>}, {pipeline_mode = #tpu.pipeline_mode<synchronous>, transform_indices = @transform_2, window_bounds = array<i64: 1, 4, 1>}, {pipeline_mode = #tpu.pipeline_mode<synchronous>, transform_indices = @transform_3, window_bounds = array<i64: 8, 4>}, {pipeline_mode = #tpu.pipeline_mode<synchronous>, transform_indices = @transform_4, window_bounds = array<i64: 1, 8, 1>}, {pipeline_mode = #tpu.pipeline_mode<synchronous>, transform_indices = @transform_5, window_bounds = array<i64: 2, 8, 256>}]} {
    %c0 = arith.constant 0 : index
    %c0_0 = arith.constant 0 : index
    %c0_1 = arith.constant 0 : index
    %0 = vector.load %arg1[%c0, %c0_0, %c0_1] : memref<2x4x256xf32, #tpu.memory_space<vmem>>, vector<2x4x256xf32>
    %cst = arith.constant dense<0.000000e+00> : vector<2x4xf32>
    %1 = vector.multi_reduction <add>, %0, %cst [2] : vector<2x4x256xf32> to vector<2x4xf32>
    %2 = vector.shape_cast %1 : vector<2x4xf32> to vector<2x4x1xf32>
    %cst_2 = arith.constant 2.560000e+02 : f32
    %3 = vector.broadcast %cst_2 : f32 to vector<2x4x1xf32>
    %4 = arith.divf %2, %3 : vector<2x4x1xf32>
    %5 = vector.broadcast %4 : vector<2x4x1xf32> to vector<2x4x256xf32>
    %6 = arith.subf %0, %5 : vector<2x4x256xf32>
    %7 = arith.mulf %6, %6 : vector<2x4x256xf32>
    %cst_3 = arith.constant dense<0.000000e+00> : vector<2x4xf32>
    %8 = vector.multi_reduction <add>, %7, %cst_3 [2] : vector<2x4x256xf32> to vector<2x4xf32>
    %9 = vector.shape_cast %8 : vector<2x4xf32> to vector<2x4x1xf32>
    %cst_4 = arith.constant 2.560000e+02 : f32
    %10 = vector.broadcast %cst_4 : f32 to vector<2x4x1xf32>
    %11 = arith.divf %9, %10 : vector<2x4x1xf32>
    %cst_5 = arith.constant 1.000000e-03 : f32
    %12 = vector.broadcast %cst_5 : f32 to vector<2x4x1xf32>
    %13 = arith.addf %11, %12 : vector<2x4x1xf32>
    %14 = math.rsqrt %13 : vector<2x4x1xf32>
    %15 = arith.mulf %11, %14 : vector<2x4x1xf32>
    %16 = arith.mulf %15, %14 : vector<2x4x1xf32>
    %cst_6 = arith.constant dense<0.000000e+00> : vector<4x1xf32>
    %17 = vector.multi_reduction <add>, %16, %cst_6 [0] : vector<2x4x1xf32> to vector<4x1xf32>
    %18 = vector.shape_cast %17 : vector<4x1xf32> to vector<1x4x1xf32>
    %cst_7 = arith.constant 2.000000e+00 : f32
    %19 = vector.broadcast %cst_7 : f32 to vector<1x4x1xf32>
    %20 = arith.divf %18, %19 : vector<1x4x1xf32>
    %cst_8 = arith.constant 9.99999974E-6 : f32
    %21 = vector.broadcast %cst_8 : f32 to vector<1x4x1xf32>
    %22 = arith.addf %20, %21 : vector<1x4x1xf32>
    %23 = math.rsqrt %22 : vector<1x4x1xf32>
    %c0_9 = arith.constant 0 : index
    %c0_10 = arith.constant 0 : index
    %c0_11 = arith.constant 0 : index
    %24 = vector.load %arg2[%c0_9, %c0_10, %c0_11] : memref<1x4x1xf32, #tpu.memory_space<vmem>>, vector<1x4x1xf32>
    %25 = vector.broadcast %24 : vector<1x4x1xf32> to vector<2x4x1xf32>
    %26 = arith.mulf %25, %14 : vector<2x4x1xf32>
    %27 = vector.broadcast %23 : vector<1x4x1xf32> to vector<2x4x1xf32>
    %28 = arith.mulf %26, %27 : vector<2x4x1xf32>
    %c0_12 = arith.constant 0 : index
    %c0_13 = arith.constant 0 : index
    %c0_14 = arith.constant 0 : index
    %29 = vector.load %arg3[%c0_12, %c0_13, %c0_14] : memref<1x4x1xf32, #tpu.memory_space<vmem>>, vector<1x4x1xf32>
    %30 = vector.broadcast %28 : vector<2x4x1xf32> to vector<2x4x256xf32>
    %31 = arith.mulf %6, %30 : vector<2x4x256xf32>
    %32 = vector.broadcast %29 : vector<1x4x1xf32> to vector<2x4x256xf32>
    %33 = arith.addf %31, %32 : vector<2x4x256xf32>
    %cst_15 = arith.constant 0.000000e+00 : f32
    %34 = vector.broadcast %cst_15 : f32 to vector<2x4x256xf32>
    %35 = arith.maximumf %33, %34 : vector<2x4x256xf32>
    %c0_16 = arith.constant 0 : index
    %c0_17 = arith.constant 0 : index
    %36 = vector.load %arg4[%c0_16, %c0_17] : memref<8x4xf32, #tpu.memory_space<vmem>>, vector<8x4xf32>
    "tpu.trace_start"() <{level = 10 : i32, message = "oc,nct->not"}> : () -> ()
    %cst_18 = arith.constant dense<0.000000e+00> : vector<2x256x8xf32>
    %37 = tpu.matmul %35, %36, %cst_18 {dimension_numbers = #tpu.dot_dimension_numbers<[1], [1], [0, 2], [0], [0, 0, 0, 2, 1, 0], [], []>} : vector<2x4x256xf32>, vector<8x4xf32>, vector<2x256x8xf32> -> vector<2x256x8xf32>
    %38 = tpu.transpose %37, [0, 2, 1] : vector<2x256x8xf32> -> vector<2x8x256xf32>
    "tpu.trace_stop"() : () -> ()
    %c0_19 = arith.constant 0 : index
    %c0_20 = arith.constant 0 : index
    %c0_21 = arith.constant 0 : index
    %39 = vector.load %arg5[%c0_19, %c0_20, %c0_21] : memref<1x8x1xf32, #tpu.memory_space<vmem>>, vector<1x8x1xf32>
    %40 = vector.broadcast %39 : vector<1x8x1xf32> to vector<2x8x256xf32>
    %41 = arith.addf %38, %40 : vector<2x8x256xf32>
    %c0_22 = arith.constant 0 : index
    %c0_23 = arith.constant 0 : index
    %c0_24 = arith.constant 0 : index
    %42 = vector.load %arg6[%c0_22, %c0_23, %c0_24] : memref<2x8x256xf32, #tpu.memory_space<vmem>>, vector<2x8x256xf32>
    tpu.vector_store %arg6[%c0_22, %c0_23, %c0_24], %41 {strides = array<i32>} : memref<2x8x256xf32, #tpu.memory_space<vmem>>, vector<2x8x256xf32>,
    return
  }
  func.func @transform_0(%arg0: i32) -> (i32, i32, i32) {
    %c0_i32 = arith.constant 0 : i32
    %c0_i32_0 = arith.constant 0 : i32
    %c0_i32_1 = arith.constant 0 : i32
    %c0_i32_2 = arith.constant 0 : i32
    return %c0_i32, %c0_i32_0, %c0_i32_1 : i32, i32, i32
  }
  func.func @transform_1(%arg0: i32) -> (i32, i32, i32) {
    %c0_i32 = arith.constant 0 : i32
    %c0_i32_0 = arith.constant 0 : i32
    %c0_i32_1 = arith.constant 0 : i32
    %c0_i32_2 = arith.constant 0 : i32
    return %c0_i32, %c0_i32_0, %c0_i32_1 : i32, i32, i32
  }
  func.func @transform_2(%arg0: i32) -> (i32, i32, i32) {
    %c0_i32 = arith.constant 0 : i32
    %c0_i32_0 = arith.constant 0 : i32
    %c0_i32_1 = arith.constant 0 : i32
    %c0_i32_2 = arith.constant 0 : i32
    return %c0_i32, %c0_i32_0, %c0_i32_1 : i32, i32, i32
  }
  func.func @transform_3(%arg0: i32) -> (i32, i32) {
    %c0_i32 = arith.constant 0 : i32
    %c0_i32_0 = arith.constant 0 : i32
    %c0_i32_1 = arith.constant 0 : i32
    return %c0_i32, %c0_i32_0 : i32, i32
  }
  func.func @transform_4(%arg0: i32) -> (i32, i32, i32) {
    %c0_i32 = arith.constant 0 : i32
    %c0_i32_0 = arith.constant 0 : i32
    %c0_i32_1 = arith.constant 0 : i32
    %c0_i32_2 = arith.constant 0 : i32
    return %c0_i32, %c0_i32_0, %c0_i32_1 : i32, i32, i32
  }
  func.func @transform_5(%arg0: i32) -> (i32, i32, i32) {
    %c0_i32 = arith.constant 0 : i32
    %c0_i32_0 = arith.constant 0 : i32
    %c0_i32_1 = arith.constant 0 : i32
    %c0_i32_2 = arith.constant 0 : i32
    return %c0_i32, %c0_i32_0, %c0_i32_1 : i32, i32, i32
  }
}

</mosaic_0001>

<bundles_post_ra>
// kernel: tpu_custom_call.1
= control target key start
LH: loop header
LB: loop body
LE: loop exit
PB: predicated region body
PF: predicated region fallthrough
CT: control target
= control target key end

     0   :  { %s1158_s0 = inlined_call_operand.vmem [shape: f32[2,4,256], index: 0, kind: input, shape index: {}]   ;;  %s1159_s1 = inlined_call_operand.vmem [shape: f32[1,4,1], index: 1, kind: input, shape index: {}]   ;;  %s1160_s2 = inlined_call_operand.vmem [shape: f32[1,4,1], index: 2, kind: input, shape index: {}]   ;;  %s1161_s3 = inlined_call_operand.vmem [shape: f32[8,4], index: 3, kind: input, shape index: {}]   ;;  %s1162_s4 = inlined_call_operand.vmem [shape: f32[1,8,1], index: 4, kind: input, shape index: {}]   ;;  %s1163_s5 = inlined_call_operand.hbm [shape: f32[2,8,256], index: 5, kind: output, shape index: {}]  }
   0x1   :  { %v21_v0 = vld [vmem:[%s1158_s0] sm:$0xff]  ;;  %v22_v1 = vld [vmem:[%s1158_s0 + $0x8] sm:$0xff] }
   0x2   :  { %25 = vst [vmem:[#allocation1] ss:$2 sm:$0xff] %v21_v0 }
   0x3   :  { %10 = vsyncpa [#allocation3], 0  ;;  %29 = vst [vmem:[#allocation1 + $0x10] ss:$2 sm:$0xff] %v22_v1  ;;  %vm36_vm0 = vcmask 1043456   ;;  %v1005_v12 = vmov 256.0  }
   0x4   :  { %969 = vrcp.f32 %v1005_v12  ;;  %v1006_v18 = vmov 839922192   ;;  %v1007_v45 = vmov 0   ;;  %v150_v46 = vld [vmem:[%s1160_s2] sm:$0xf]  ;;  %v1008_v49 = vmov 2.0  }
   0x5   :  { %v59_v19 = vunpack.c.l.s4 %v1006_v18  ;;  %967 = vset.pattern.permute.xlu0 %v1007_v45  ;;  %968 = vset.pattern.permute.xlu2 %v1007_v45  ;;  %vm326_vm12 = vcmask 31744   ;;  %s879_s29 = sshll.u32 %s1163_s5, 4  ;;  %s1010_s30 = smov 256   ;;  %s880_s29 = int_to_ptr.hbm [resolvable:$true] %s879_s29 }
   0x6   :  { %s1011_s6 = smov 16  }
   0x7   :  { %v1052_v21 = vunpack.c.0.s8 %v59_v19 }
   0x9   :  { %v26_v2 = vld.sshfl [vmem:[#allocation1] sm:$0xff pattern:$0x75316420]  ;;  %v27_v3 = vld.sshfl [vmem:[#allocation1 + $0x8] sm:$0xff pattern:$0x75316420] }
   0xa   :  { %v37_v4 = vsel %vm36_vm0, %v26_v2, 0.0  ;;  %v38_v5 = vsel %vm36_vm0, %v27_v3, 0.0  ;;  %v30_v7 = vld.sshfl [vmem:[#allocation1 + $0x10] sm:$0xff pattern:$0x75316420]  ;;  %v970_v13 = vpop.eup %969 }
   0xb   :  { %v39_v6 = vadd.f32 %v38_v5, %v37_v4  ;;  %v31_v8 = vld.sshfl [vmem:[#allocation1 + $0x18] sm:$0xff pattern:$0x75316420]  ;;  %v42_v9 = vsel %vm36_vm0, %v30_v7, 0.0  ;;  %v48_v14 = vmul.f32 256.0, %v970_v13  ;;  %vm52_vm1 = vweird.f32 %v970_v13 }
   0xc   :  { %v43_v10 = vsel %vm36_vm0, %v31_v8, 0.0 }
   0xd   :  { %40 = vadd.xlane.f32.xlu0 %v39_v6  ;;  %v44_v11 = vadd.f32 %v43_v10, %v42_v9  ;;  %v49_v15 = vsub.f32 1.0, %v48_v14 }
   0xf   :  { %v50_v16 = vmul.f32 %v970_v13, %v49_v15 }
  0x11   :  { %v51_v17 = vadd.f32 %v970_v13, %v50_v16 }
  0x13   :  { %v53_v20 = vsel %vm52_vm1, %v970_v13, %v51_v17 }
  0x15   :  { %45 = vadd.xlane.f32.xlu0 %v44_v11 }
  0x29   :  { %173 = vperm.xlu0 %967, %v150_v46  }
  0x80   :  { %v41_v22 = vpop.xlane.xlu0 %40 }
  0x81   :  { %v54_v23 = vmul.f32 %v53_v20, %v41_v22  ;;  %v145_v22 = vld [vmem:[%s1159_s1] sm:$0xf] }
  0x83   :  { %v61_v24 = vperm.slane %v54_v23, %v1052_v21 }
  0x85   :  { %v1055_v25 = vsub.f32 %v21_v0, %v61_v24 }
  0x87   :  { %v70_v26 = vmul.f32 %v1055_v25, %v1055_v25 }
  0x88   :  { %v46_v27 = vpop.xlane.xlu0 %45 }
  0x89   :  { %74 = vst [vmem:[#allocation1] ss:$2 sm:$0xff] %v70_v26  ;;  %v55_v28 = vmul.f32 %v53_v20, %v46_v27 }
  0x8b   :  { %v65_v29 = vperm.slane %v55_v28, %v1052_v21 }
  0x8d   :  { %v1060_v30 = vsub.f32 %v22_v1, %v65_v29 }
  0x8f   :  { %v71_v31 = vmul.f32 %v1060_v30, %v1060_v30 }
  0x90   :  { %v75_v32 = vld.sshfl [vmem:[#allocation1] sm:$0xff pattern:$0x75316420]  ;;  %v76_v33 = vld.sshfl [vmem:[#allocation1 + $0x8] sm:$0xff pattern:$0x75316420] }
  0x91   :  { %78 = vst [vmem:[#allocation1 + $0x10] ss:$2 sm:$0xff] %v71_v31  ;;  %v85_v34 = vsel %vm36_vm0, %v75_v32, 0.0  ;;  %v86_v35 = vsel %vm36_vm0, %v76_v33, 0.0 }
  0x92   :  { %v87_v36 = vadd.f32 %v86_v35, %v85_v34 }
  0x94   :  { %88 = vadd.xlane.f32.xlu1 %v87_v36 }
  0x98   :  { %v79_v37 = vld.sshfl [vmem:[#allocation1 + $0x10] sm:$0xff pattern:$0x75316420]  ;;  %v80_v38 = vld.sshfl [vmem:[#allocation1 + $0x18] sm:$0xff pattern:$0x75316420] }
  0x99   :  { %v90_v39 = vsel %vm36_vm0, %v79_v37, 0.0  ;;  %v91_v40 = vsel %vm36_vm0, %v80_v38, 0.0 }
  0x9a   :  { %v92_v41 = vadd.f32 %v91_v40, %v90_v39 }
  0x9b   :  { %v174_v31 = vpop.permute.xlu0 %173 }
  0x9c   :  { %93 = vadd.xlane.f32.xlu1 %v92_v41  ;;  %v178_v34 = vperm.slane %v174_v31, %v1052_v21 }
 0x107   :  { %v89_v42 = vpop.xlane.xlu1 %88 }
 0x108   :  { %v95_v43 = vmul.f32 %v89_v42, %v53_v20 }
 0x10a   :  { %v97_v44 = vadd.f32 0.001, %v95_v43 }
 0x10c   :  { %971 = vrsqrt.f32 %v97_v44  ;;  %vm105_vm3 = vweird.f32 %v97_v44 }
 0x10d   :  { %973 = vrcp.f32 %v1008_v49 }
 0x10f   :  { %v94_v47 = vpop.xlane.xlu1 %93 }
 0x110   :  { %v96_v48 = vmul.f32 %v94_v47, %v53_v20 }
 0x112   :  { %v972_v50 = vpop.eup %971  ;;  %v98_v51 = vadd.f32 0.001, %v96_v48 }
 0x113   :  { %v100_v52 = vmul.f32 %v972_v50, %v97_v44  ;;  %v974_v54 = vpop.eup %973  ;;  %vm106_vm2 = vweird.f32 %v972_v50 }
 0x114   :  { %975 = vrsqrt.f32 %v98_v51  ;;  %v127_v58 = vmul.f32 2.0, %v974_v54  ;;  %vm107_vm4 = vmor %vm105_vm3, %vm106_vm2  ;;  %vm115_vm6 = vweird.f32 %v98_v51  ;;  %vm131_vm8 = vweird.f32 %v974_v54 }
 0x115   :  { %v101_v53 = vmul.f32 %v972_v50, %v100_v52 }
 0x116   :  { %v128_v62 = vsub.f32 1.0, %v127_v58 }
 0x117   :  { %v102_v55 = vmul.f32 0.5, %v101_v53 }
 0x118   :  { %v129_v3 = vmul.f32 %v974_v54, %v128_v62 }
 0x119   :  { %v103_v56 = vsub.f32 1.5, %v102_v55 }
 0x11a   :  { %v976_v57 = vpop.eup %975  ;;  %v130_v7 = vadd.f32 %v974_v54, %v129_v3 }
 0x11b   :  { %v104_v59 = vmul.f32 %v972_v50, %v103_v56  ;;  %v110_v60 = vmul.f32 %v976_v57, %v98_v51  ;;  %vm116_vm5 = vweird.f32 %v976_v57 }
 0x11c   :  { %vm117_vm7 = vmor %vm115_vm6, %vm116_vm5  ;;  %v132_v11 = vsel %vm131_vm8, %v974_v54, %v130_v7 }
 0x11d   :  { %v111_v61 = vmul.f32 %v976_v57, %v110_v60  ;;  %v108_v63 = vsel %vm107_vm4, %v972_v50, %v104_v59 }
 0x11e   :  { %v119_v2 = vmul.f32 %v108_v63, %v95_v43  ;;  %v146_v24 = vmul.f32 %v145_v22, %v108_v63 }
 0x11f   :  { %v112_v0 = vmul.f32 0.5, %v111_v61 }
 0x120   :  { %v121_v6 = vmul.f32 %v119_v2, %v108_v63 }
 0x121   :  { %v113_v1 = vsub.f32 1.5, %v112_v0 }
 0x122   :  { %v123_v10 = vsel %vm36_vm0, %v121_v6, 0.0 }
 0x123   :  { %v114_v4 = vmul.f32 %v976_v57, %v113_v1 }
 0x125   :  { %v118_v5 = vsel %vm117_vm7, %v976_v57, %v114_v4 }
 0x126   :  { %v120_v8 = vmul.f32 %v118_v5, %v96_v48  ;;  %v147_v28 = vmul.f32 %v145_v22, %v118_v5 }
 0x128   :  { %v122_v9 = vmul.f32 %v120_v8, %v118_v5 }
 0x12a   :  { %v124_v12 = vsel %vm36_vm0, %v122_v9, 0.0 }
 0x12b   :  { %v125_v13 = vadd.f32 %v124_v12, %v123_v10 }
 0x12d   :  { %v133_v14 = vmul.f32 %v132_v11, %v125_v13 }
 0x12f   :  { %v134_v15 = vadd.f32 1e-05, %v133_v14 }
 0x131   :  { %977 = vrsqrt.f32 %v134_v15  ;;  %vm141_vm10 = vweird.f32 %v134_v15 }
 0x137   :  { %v978_v16 = vpop.eup %977 }
 0x138   :  { %v136_v17 = vmul.f32 %v978_v16, %v134_v15  ;;  %vm142_vm9 = vweird.f32 %v978_v16 }
 0x139   :  { %vm143_vm11 = vmor %vm141_vm10, %vm142_vm9 }
 0x13a   :  { %v137_v18 = vmul.f32 %v978_v16, %v136_v17 }
 0x13c   :  { %v138_v19 = vmul.f32 0.5, %v137_v18 }
 0x13e   :  { %v139_v20 = vsub.f32 1.5, %v138_v19 }
 0x140   :  { %v140_v23 = vmul.f32 %v978_v16, %v139_v20 }
 0x142   :  { %v144_v26 = vsel %vm143_vm11, %v978_v16, %v140_v23 }
 0x143   :  { %v148_v27 = vmul.f32 %v146_v24, %v144_v26  ;;  %v149_v29 = vmul.f32 %v147_v28, %v144_v26 }
 0x145   :  { %153 = vperm.xlu2 %968, %v148_v27  }
 0x14d   :  { %157 = vperm.xlu2 %968, %v149_v29  }
 0x19f   :  { %v154_v32 = vpop.permute.xlu2 %153 }
 0x1a0   :  { %v162_v33 = vperm.slane %v154_v32, %v1052_v21 }
 0x1a2   :  { %v169_v35 = vmul.f32 %v162_v33, %v1055_v25  ;;  %v184_v25 = vld [vmem:[%s1161_s3] sm:$0xff] }
 0x1a3   :  { %956 = vmatpush.xpose.msk.msra.mxu1 %vm326_vm12, %v184_v25  ;;  %891 = vmatpush.xpose.msk.msra.mxu0 %vm326_vm12, %v184_v25 }
 0x1a4   :  { %v180_v36 = vadd.f32 %v178_v34, %v169_v35  ;;  %958 = vmatpush.xpose.msk.msra.mxu3 %vm326_vm12, %v184_v25  ;;  %957 = vmatpush.xpose.msk.msra.mxu2 %vm326_vm12, %v184_v25 }
 0x1a6   :  { %v182_v37 = vmax.f32 %v180_v36, 0.0 }
 0x1a7   :  { %v158_v38 = vpop.permute.xlu2 %157 }
 0x1a8   :  { %187 = vst [vmem:[#allocation1] ss:$2 sm:$0xff] %v182_v37  ;;  %v166_v39 = vperm.slane %v158_v38, %v1052_v21 }
 0x1aa   :  { %v170_v40 = vmul.f32 %v166_v39, %v1060_v30 }
 0x1ac   :  { %v181_v41 = vadd.f32 %v178_v34, %v170_v40 }
 0x1ae   :  { %v183_v42 = vmax.f32 %v181_v41, 0.0 }
 0x1af   :  { %v189_v43 = vld.sshfl [vmem:[#allocation1 + $0x8] sm:$0xff pattern:$0x75316420]  ;;  %v188_v44 = vld.sshfl [vmem:[#allocation1] sm:$0xff pattern:$0x75316420] }
 0x1b0   :  { %191 = vst [vmem:[#allocation1 + $0x10] ss:$2 sm:$0xff] %v183_v42  ;;  %230 = vxpose.xlu2.b32.start.end [1/1] (short) %v189_v43, 128  ;;  %198 = vxpose.xlu1.b32.start.end [1/1] (short) %v188_v44, 128 }
 0x1b7   :  { %v193_v45 = vld.sshfl [vmem:[#allocation1 + $0x18] sm:$0xff pattern:$0x75316420]  ;;  %v192_v21 = vld.sshfl [vmem:[#allocation1 + $0x10] sm:$0xff pattern:$0x75316420] }
 0x1b8   :  { %294 = vxpose.xlu0.b32.start.end [1/1] (short) %v193_v45, 128 }
 0x230   :  { %262 = vxpose.xlu2.b32.start.end [1/1] (short) %v192_v21, 128 }
 0x249   :  { %v246_v30 = vpop.trf.xlu2 }
 0x24a   :  { %908 = vmatmul.msk.f32.vlgmr.msra.gmra.mxu1 %vm326_vm12, %v246_v30 }
 0x251   :  { %v247_v46 = vpop.trf.xlu2 }
 0x252   :  { %909 = vmatmul.msk.f32.gmra.mxu1 %vm326_vm12, %v247_v46 }
 0x254   :  { %v214_v48 = vpop.trf.xlu1 }
 0x255   :  { %892 = vmatmul.msk.f32.vlgmr.msra.gmra.mxu0 %vm326_vm12, %v214_v48 }
 0x259   :  { %v248_v47 = vpop.trf.xlu2 }
 0x25a   :  { %910 = vmatmul.msk.f32.gmra.mxu1 %vm326_vm12, %v248_v47 }
 0x25c   :  { %v215_v50 = vpop.trf.xlu1  ;;  %v310_v14 = vpop.trf.xlu0 }
 0x25d   :  { %893 = vmatmul.msk.f32.gmra.mxu0 %vm326_vm12, %v215_v50  ;;  %940 = vmatmul.msk.f32.vlgmr.msra.gmra.mxu3 %vm326_vm12, %v310_v14 }
 0x261   :  { %v249_v49 = vpop.trf.xlu2 }
 0x262   :  { %911 = vmatmul.msk.f32.gmra.mxu1 %vm326_vm12, %v249_v49 }
 0x264   :  { %v216_v52 = vpop.trf.xlu1  ;;  %v311_v18 = vpop.trf.xlu0 }
 0x265   :  { %894 = vmatmul.msk.f32.gmra.mxu0 %vm326_vm12, %v216_v52  ;;  %941 = vmatmul.msk.f32.gmra.mxu3 %vm326_vm12, %v311_v18 }
 0x269   :  { %v250_v51 = vpop.trf.xlu2 }
 0x26a   :  { %912 = vmatmul.msk.f32.gmra.mxu1 %vm326_vm12, %v250_v51 }
 0x26c   :  { %v217_v54 = vpop.trf.xlu1  ;;  %v312_v23 = vpop.trf.xlu0 }
 0x26d   :  { %895 = vmatmul.msk.f32.gmra.mxu0 %vm326_vm12, %v217_v54  ;;  %942 = vmatmul.msk.f32.gmra.mxu3 %vm326_vm12, %v312_v23 }
 0x271   :  { %v251_v53 = vpop.trf.xlu2 }
 0x272   :  { %913 = vmatmul.msk.f32.gmra.mxu1 %vm326_vm12, %v251_v53 }
 0x274   :  { %v218_v56 = vpop.trf.xlu1  ;;  %v313_v28 = vpop.trf.xlu0 }
 0x275   :  { %896 = vmatmul.msk.f32.gmra.mxu0 %vm326_vm12, %v218_v56  ;;  %943 = vmatmul.msk.f32.gmra.mxu3 %vm326_vm12, %v313_v28 }
 0x279   :  { %v252_v55 = vpop.trf.xlu2 }
 0x27a   :  { %914 = vmatmul.msk.f32.gmra.mxu1 %vm326_vm12, %v252_v55 }
 0x27c   :  { %v219_v58 = vpop.trf.xlu1  ;;  %v314_v33 = vpop.trf.xlu0 }
 0x27d   :  { %897 = vmatmul.msk.f32.gmra.mxu0 %vm326_vm12, %v219_v58  ;;  %944 = vmatmul.msk.f32.gmra.mxu3 %vm326_vm12, %v314_v33 }
 0x281   :  { %v253_v57 = vpop.trf.xlu2 }
 0x282   :  { %915 = vmatmul.msk.f32.gmra.mxu1 %vm326_vm12, %v253_v57 }
 0x284   :  { %v220_v60 = vpop.trf.xlu1  ;;  %v315_v37 = vpop.trf.xlu0 }
 0x285   :  { %898 = vmatmul.msk.f32.gmra.mxu0 %vm326_vm12, %v220_v60  ;;  %945 = vmatmul.msk.f32.gmra.mxu3 %vm326_vm12, %v315_v37 }
 0x289   :  { %v254_v59 = vpop.trf.xlu2 }
 0x28a   :  { %916 = vmatmul.msk.f32.gmra.mxu1 %vm326_vm12, %v254_v59 }
 0x28c   :  { %v221_v62 = vpop.trf.xlu1  ;;  %v316_v41 = vpop.trf.xlu0 }
 0x28d   :  { %899 = vmatmul.msk.f32.gmra.mxu0 %vm326_vm12, %v221_v62  ;;  %946 = vmatmul.msk.f32.gmra.mxu3 %vm326_vm12, %v316_v41 }
 0x291   :  { %v255_v61 = vpop.trf.xlu2 }
 0x292   :  { %917 = vmatmul.msk.f32.gmra.mxu1 %vm326_vm12, %v255_v61 }
 0x294   :  { %v222_v0 = vpop.trf.xlu1  ;;  %v317_v45 = vpop.trf.xlu0 }
 0x295   :  { %900 = vmatmul.msk.f32.gmra.mxu0 %vm326_vm12, %v222_v0  ;;  %947 = vmatmul.msk.f32.gmra.mxu3 %vm326_vm12, %v317_v45 }
 0x299   :  { %v256_v63 = vpop.trf.xlu2 }
 0x29a   :  { %918 = vmatmul.msk.f32.gmra.mxu1 %vm326_vm12, %v256_v63 }
 0x29c   :  { %v223_v2 = vpop.trf.xlu1  ;;  %v318_v46 = vpop.trf.xlu0 }
 0x29d   :  { %901 = vmatmul.msk.f32.gmra.mxu0 %vm326_vm12, %v223_v2  ;;  %948 = vmatmul.msk.f32.gmra.mxu3 %vm326_vm12, %v318_v46 }
 0x2a1   :  { %v257_v1 = vpop.trf.xlu2 }
 0x2a2   :  { %919 = vmatmul.msk.f32.gmra.mxu1 %vm326_vm12, %v257_v1 }
 0x2a4   :  { %v224_v4 = vpop.trf.xlu1  ;;  %v319_v50 = vpop.trf.xlu0 }
 0x2a5   :  { %902 = vmatmul.msk.f32.gmra.mxu0 %vm326_vm12, %v224_v4  ;;  %949 = vmatmul.msk.f32.gmra.mxu3 %vm326_vm12, %v319_v50 }
 0x2a9   :  { %v258_v3 = vpop.trf.xlu2 }
 0x2aa   :  { %920 = vmatmul.msk.f32.gmra.mxu1 %vm326_vm12, %v258_v3 }
 0x2ac   :  { %v225_v6 = vpop.trf.xlu1  ;;  %v320_v54 = vpop.trf.xlu0 }
 0x2ad   :  { %903 = vmatmul.msk.f32.gmra.mxu0 %vm326_vm12, %v225_v6  ;;  %950 = vmatmul.msk.f32.gmra.mxu3 %vm326_vm12, %v320_v54 }
 0x2b1   :  { %v259_v5 = vpop.trf.xlu2 }
 0x2b2   :  { %921 = vmatmul.msk.f32.gmra.mxu1 %vm326_vm12, %v259_v5 }
 0x2b4   :  { %v226_v8 = vpop.trf.xlu1  ;;  %v321_v58 = vpop.trf.xlu0 }
 0x2b5   :  { %904 = vmatmul.msk.f32.gmra.mxu0 %vm326_vm12, %v226_v8  ;;  %951 = vmatmul.msk.f32.gmra.mxu3 %vm326_vm12, %v321_v58 }
 0x2b9   :  { %v260_v7 = vpop.trf.xlu2 }
 0x2ba   :  { %922 = vmatmul.msk.f32.gmra.mxu1 %vm326_vm12, %v260_v7 }
 0x2bc   :  { %v227_v10 = vpop.trf.xlu1  ;;  %v322_v62 = vpop.trf.xlu0 }
 0x2bd   :  { %905 = vmatmul.msk.f32.gmra.mxu0 %vm326_vm12, %v227_v10  ;;  %952 = vmatmul.msk.f32.gmra.mxu3 %vm326_vm12, %v322_v62 }
 0x2c1   :  { %v261_v9 = vpop.trf.xlu2 }
 0x2c2   :  { %923 = vmatmul.msk.f32.gmra.mxu1 %vm326_vm12, %v261_v9 }
 0x2c4   :  { %v228_v12 = vpop.trf.xlu1  ;;  %v323_v2 = vpop.trf.xlu0 }
 0x2c5   :  { %906 = vmatmul.msk.f32.gmra.mxu0 %vm326_vm12, %v228_v12  ;;  %953 = vmatmul.msk.f32.gmra.mxu3 %vm326_vm12, %v323_v2 }
 0x2c7   :  { %v587_v11 = vpop.f32.mrf.mxu1 }
 0x2c8   :  { %763 = vxpose.xlu0.b32.start [1/16] (narrow) %v587_v11, 8 }
 0x2c9   :  { %v278_v20 = vpop.trf.xlu2 }
 0x2ca   :  { %924 = vmatmul.msk.f32.vlgmr.msra.gmra.mxu2 %vm326_vm12, %v278_v20 }
 0x2cc   :  { %v229_v15 = vpop.trf.xlu1  ;;  %v324_v6 = vpop.trf.xlu0 }
 0x2cd   :  { %907 = vmatmul.msk.f32.gmra.mxu0 %vm326_vm12, %v229_v15  ;;  %954 = vmatmul.msk.f32.gmra.mxu3 %vm326_vm12, %v324_v6 }
 0x2cf   :  { %v590_v13 = vpop.f32.mrf.mxu1 }
 0x2d0   :  { %764 = vxpose.xlu0.b32.cont [2/16] (narrow) %v590_v13, 8 }
 0x2d1   :  { %v279_v26 = vpop.trf.xlu2 }
 0x2d2   :  { %v539_v17 = vpop.f32.mrf.mxu0  ;;  %925 = vmatmul.msk.f32.gmra.mxu2 %vm326_vm12, %v279_v26 }
 0x2d3   :  { %731 = vxpose.xlu1.b32.start [1/16] (narrow) %v539_v17, 8 }
 0x2d4   :  { %v325_v9 = vpop.trf.xlu0 }
 0x2d5   :  { %955 = vmatmul.msk.f32.gmra.mxu3 %vm326_vm12, %v325_v9 }
 0x2d7   :  { %v593_v16 = vpop.f32.mrf.mxu1 }
 0x2d8   :  { %765 = vxpose.xlu0.b32.cont [3/16] (narrow) %v593_v16, 8 }
 0x2d9   :  { %v280_v31 = vpop.trf.xlu2 }
 0x2da   :  { %v542_v22 = vpop.f32.mrf.mxu0  ;;  %926 = vmatmul.msk.f32.gmra.mxu2 %vm326_vm12, %v280_v31 }
 0x2db   :  { %732 = vxpose.xlu1.b32.cont [2/16] (narrow) %v542_v22, 8 }
 0x2df   :  { %v596_v19 = vpop.f32.mrf.mxu1 }
 0x2e0   :  { %766 = vxpose.xlu0.b32.cont [4/16] (narrow) %v596_v19, 8  ;;  %v683_v12 = vpop.f32.mrf.mxu3 }
 0x2e1   :  { %v281_v35 = vpop.trf.xlu2 }
 0x2e2   :  { %v545_v27 = vpop.f32.mrf.mxu0  ;;  %927 = vmatmul.msk.f32.gmra.mxu2 %vm326_vm12, %v281_v35 }
 0x2e3   :  { %733 = vxpose.xlu1.b32.cont [3/16] (narrow) %v545_v27, 8 }
 0x2e7   :  { %v599_v24 = vpop.f32.mrf.mxu1 }
 0x2e8   :  { %767 = vxpose.xlu0.b32.cont [5/16] (narrow) %v599_v24, 8  ;;  %v686_v14 = vpop.f32.mrf.mxu3 }
 0x2e9   :  { %v282_v39 = vpop.trf.xlu2 }
 0x2ea   :  { %v548_v32 = vpop.f32.mrf.mxu0  ;;  %928 = vmatmul.msk.f32.gmra.mxu2 %vm326_vm12, %v282_v39 }
 0x2eb   :  { %734 = vxpose.xlu1.b32.cont [4/16] (narrow) %v548_v32, 8 }
 0x2ef   :  { %v602_v29 = vpop.f32.mrf.mxu1 }
 0x2f0   :  { %768 = vxpose.xlu0.b32.cont [6/16] (narrow) %v602_v29, 8  ;;  %v689_v16 = vpop.f32.mrf.mxu3 }
 0x2f1   :  { %v283_v43 = vpop.trf.xlu2 }
 0x2f2   :  { %v551_v36 = vpop.f32.mrf.mxu0  ;;  %929 = vmatmul.msk.f32.gmra.mxu2 %vm326_vm12, %v283_v43 }
 0x2f3   :  { %735 = vxpose.xlu1.b32.cont [5/16] (narrow) %v551_v36, 8  ;;  %v859_v36 = vld [vmem:[%s1162_s4] sm:$0xff]  ;;  %s1009_s4 = smov [#allocation2]  }
 0x2f4   :  { %s877_s26 = sshll.u32 %s1009_s4, 4  ;;  %s878_s26 = int_to_ptr.vmem [resolvable:$true] %s877_s26 }
 0x2f7   :  { %v605_v34 = vpop.f32.mrf.mxu1 }
 0x2f8   :  { %769 = vxpose.xlu0.b32.cont [7/16] (narrow) %v605_v34, 8  ;;  %v692_v18 = vpop.f32.mrf.mxu3 }
 0x2f9   :  { %v284_v21 = vpop.trf.xlu2 }
 0x2fa   :  { %v554_v40 = vpop.f32.mrf.mxu0  ;;  %930 = vmatmul.msk.f32.gmra.mxu2 %vm326_vm12, %v284_v21 }
 0x2fb   :  { %736 = vxpose.xlu1.b32.cont [6/16] (narrow) %v554_v40, 8 }
 0x2ff   :  { %v608_v38 = vpop.f32.mrf.mxu1 }
 0x300   :  { %770 = vxpose.xlu0.b32.cont [8/16] (narrow) %v608_v38, 8  ;;  %v695_v20 = vpop.f32.mrf.mxu3 }
 0x301   :  { %v285_v48 = vpop.trf.xlu2 }
 0x302   :  { %v557_v44 = vpop.f32.mrf.mxu0  ;;  %931 = vmatmul.msk.f32.gmra.mxu2 %vm326_vm12, %v285_v48 }
 0x303   :  { %737 = vxpose.xlu1.b32.cont [7/16] (narrow) %v557_v44, 8 }
 0x307   :  { %v611_v42 = vpop.f32.mrf.mxu1 }
 0x308   :  { %771 = vxpose.xlu0.b32.cont [9/16] (narrow) %v611_v42, 8  ;;  %v698_v23 = vpop.f32.mrf.mxu3 }
 0x309   :  { %v286_v52 = vpop.trf.xlu2 }
 0x30a   :  { %v560_v30 = vpop.f32.mrf.mxu0  ;;  %932 = vmatmul.msk.f32.gmra.mxu2 %vm326_vm12, %v286_v52 }
 0x30b   :  { %738 = vxpose.xlu1.b32.cont [8/16] (narrow) %v560_v30, 8 }
 0x30f   :  { %v614_v25 = vpop.f32.mrf.mxu1 }
 0x310   :  { %772 = vxpose.xlu0.b32.cont [10/16] (narrow) %v614_v25, 8  ;;  %v701_v26 = vpop.f32.mrf.mxu3 }
 0x311   :  { %v287_v56 = vpop.trf.xlu2 }
 0x312   :  { %v563_v49 = vpop.f32.mrf.mxu0  ;;  %933 = vmatmul.msk.f32.gmra.mxu2 %vm326_vm12, %v287_v56 }
 0x313   :  { %739 = vxpose.xlu1.b32.cont [9/16] (narrow) %v563_v49, 8 }
 0x317   :  { %v617_v47 = vpop.f32.mrf.mxu1 }
 0x318   :  { %773 = vxpose.xlu0.b32.cont [11/16] (narrow) %v617_v47, 8  ;;  %v704_v28 = vpop.f32.mrf.mxu3 }
 0x319   :  { %v288_v60 = vpop.trf.xlu2 }
 0x31a   :  { %v566_v53 = vpop.f32.mrf.mxu0  ;;  %934 = vmatmul.msk.f32.gmra.mxu2 %vm326_vm12, %v288_v60 }
 0x31b   :  { %740 = vxpose.xlu1.b32.cont [10/16] (narrow) %v566_v53, 8 }
 0x31f   :  { %v620_v51 = vpop.f32.mrf.mxu1 }
 0x320   :  { %774 = vxpose.xlu0.b32.cont [12/16] (narrow) %v620_v51, 8  ;;  %v707_v31 = vpop.f32.mrf.mxu3 }
 0x321   :  { %v289_v0 = vpop.trf.xlu2 }
 0x322   :  { %v569_v57 = vpop.f32.mrf.mxu0  ;;  %935 = vmatmul.msk.f32.gmra.mxu2 %vm326_vm12, %v289_v0 }
 0x323   :  { %741 = vxpose.xlu1.b32.cont [11/16] (narrow) %v569_v57, 8 }
 0x327   :  { %v623_v55 = vpop.f32.mrf.mxu1 }
 0x328   :  { %775 = vxpose.xlu0.b32.cont [13/16] (narrow) %v623_v55, 8  ;;  %v710_v33 = vpop.f32.mrf.mxu3 }
 0x329   :  { %v290_v4 = vpop.trf.xlu2 }
 0x32a   :  { %v572_v61 = vpop.f32.mrf.mxu0  ;;  %936 = vmatmul.msk.f32.gmra.mxu2 %vm326_vm12, %v290_v4 }
 0x32b   :  { %742 = vxpose.xlu1.b32.cont [12/16] (narrow) %v572_v61, 8 }
 0x32f   :  { %v626_v59 = vpop.f32.mrf.mxu1 }
 0x330   :  { %776 = vxpose.xlu0.b32.cont [14/16] (narrow) %v626_v59, 8  ;;  %v713_v35 = vpop.f32.mrf.mxu3 }
 0x331   :  { %v291_v7 = vpop.trf.xlu2 }
 0x332   :  { %v575_v1 = vpop.f32.mrf.mxu0  ;;  %937 = vmatmul.msk.f32.gmra.mxu2 %vm326_vm12, %v291_v7 }
 0x333   :  { %743 = vxpose.xlu1.b32.cont [13/16] (narrow) %v575_v1, 8 }
 0x337   :  { %v629_v63 = vpop.f32.mrf.mxu1 }
 0x338   :  { %777 = vxpose.xlu0.b32.cont [15/16] (narrow) %v629_v63, 8  ;;  %v716_v38 = vpop.f32.mrf.mxu3 }
 0x339   :  { %v292_v10 = vpop.trf.xlu2 }
 0x33a   :  { %v578_v5 = vpop.f32.mrf.mxu0  ;;  %938 = vmatmul.msk.f32.gmra.mxu2 %vm326_vm12, %v292_v10 }
 0x33b   :  { %744 = vxpose.xlu1.b32.cont [14/16] (narrow) %v578_v5, 8 }
 0x33f   :  { %v632_v3 = vpop.f32.mrf.mxu1 }
 0x340   :  { %778 = vxpose.xlu0.b32.end [16/16] (narrow) %v632_v3, 8  ;;  %v719_v40 = vpop.f32.mrf.mxu3 }
 0x341   :  { %v293_v13 = vpop.trf.xlu2 }
 0x342   :  { %v581_v8 = vpop.f32.mrf.mxu0  ;;  %939 = vmatmul.msk.f32.gmra.mxu2 %vm326_vm12, %v293_v13 }
 0x343   :  { %745 = vxpose.xlu1.b32.cont [15/16] (narrow) %v581_v8, 8 }
 0x348   :  { %v722_v42 = vpop.f32.mrf.mxu3 }
 0x34a   :  { %v584_v11 = vpop.f32.mrf.mxu0 }
 0x34b   :  { %746 = vxpose.xlu1.b32.end [16/16] (narrow) %v584_v11, 8 }
 0x34d   :  { %v635_v15 = vpop.f32.mrf.mxu2 }
 0x34e   :  { %795 = vxpose.xlu2.b32.start [1/16] (narrow) %v635_v15, 8 }
 0x350   :  { %v725_v44 = vpop.f32.mrf.mxu3 }
 0x353   :  { %827 = vxpose.xlu1.b32.start [1/16] (narrow) %v683_v12, 8 }
 0x355   :  { %v638_v17 = vpop.f32.mrf.mxu2 }
 0x356   :  { %796 = vxpose.xlu2.b32.cont [2/16] (narrow) %v638_v17, 8 }
 0x358   :  { %v728_v25 = vpop.f32.mrf.mxu3 }
 0x35b   :  { %828 = vxpose.xlu1.b32.cont [2/16] (narrow) %v686_v14, 8 }
 0x35d   :  { %v641_v19 = vpop.f32.mrf.mxu2 }
 0x35e   :  { %797 = vxpose.xlu2.b32.cont [3/16] (narrow) %v641_v19, 8 }
 0x363   :  { %829 = vxpose.xlu1.b32.cont [3/16] (narrow) %v689_v16, 8 }
 0x365   :  { %v644_v22 = vpop.f32.mrf.mxu2 }
 0x366   :  { %798 = vxpose.xlu2.b32.cont [4/16] (narrow) %v644_v22, 8 }
 0x36b   :  { %830 = vxpose.xlu1.b32.cont [4/16] (narrow) %v692_v18, 8 }
 0x36c   :  { %v779_v47 = vpop.trf.xlu0 }
 0x36d   :  { %v647_v24 = vpop.f32.mrf.mxu2 }
 0x36e   :  { %799 = vxpose.xlu2.b32.cont [5/16] (narrow) %v647_v24, 8 }
 0x373   :  { %831 = vxpose.xlu1.b32.cont [5/16] (narrow) %v695_v20, 8 }
 0x375   :  { %v650_v27 = vpop.f32.mrf.mxu2 }
 0x376   :  { %800 = vxpose.xlu2.b32.cont [6/16] (narrow) %v650_v27, 8 }
 0x377   :  { %v747_v46 = vpop.trf.xlu1 }
 0x37b   :  { %832 = vxpose.xlu1.b32.cont [6/16] (narrow) %v698_v23, 8 }
 0x37d   :  { %v653_v29 = vpop.f32.mrf.mxu2 }
 0x37e   :  { %801 = vxpose.xlu2.b32.cont [7/16] (narrow) %v653_v29, 8 }
 0x383   :  { %833 = vxpose.xlu1.b32.cont [7/16] (narrow) %v701_v26, 8 }
 0x385   :  { %v656_v32 = vpop.f32.mrf.mxu2 }
 0x386   :  { %802 = vxpose.xlu2.b32.cont [8/16] (narrow) %v656_v32, 8 }
 0x38b   :  { %834 = vxpose.xlu1.b32.cont [8/16] (narrow) %v704_v28, 8 }
 0x38d   :  { %v659_v34 = vpop.f32.mrf.mxu2 }
 0x38e   :  { %803 = vxpose.xlu2.b32.cont [9/16] (narrow) %v659_v34, 8 }
 0x393   :  { %835 = vxpose.xlu1.b32.cont [9/16] (narrow) %v707_v31, 8 }
 0x395   :  { %v662_v37 = vpop.f32.mrf.mxu2 }
 0x396   :  { %804 = vxpose.xlu2.b32.cont [10/16] (narrow) %v662_v37, 8 }
 0x39b   :  { %836 = vxpose.xlu1.b32.cont [10/16] (narrow) %v710_v33, 8 }
 0x39d   :  { %v665_v39 = vpop.f32.mrf.mxu2 }
 0x39e   :  { %805 = vxpose.xlu2.b32.cont [11/16] (narrow) %v665_v39, 8 }
 0x3a3   :  { %837 = vxpose.xlu1.b32.cont [11/16] (narrow) %v713_v35, 8 }
 0x3a5   :  { %v668_v41 = vpop.f32.mrf.mxu2 }
 0x3a6   :  { %806 = vxpose.xlu2.b32.cont [12/16] (narrow) %v668_v41, 8 }
 0x3ab   :  { %838 = vxpose.xlu1.b32.cont [12/16] (narrow) %v716_v38, 8 }
 0x3ad   :  { %v671_v43 = vpop.f32.mrf.mxu2 }
 0x3ae   :  { %862 = vperm.xlu0 %967, %v859_v36   ;;  %807 = vxpose.xlu2.b32.cont [13/16] (narrow) %v671_v43, 8 }
 0x3b3   :  { %839 = vxpose.xlu1.b32.cont [13/16] (narrow) %v719_v40, 8 }
 0x3b5   :  { %v674_v45 = vpop.f32.mrf.mxu2 }
 0x3b6   :  { %808 = vxpose.xlu2.b32.cont [14/16] (narrow) %v674_v45, 8 }
 0x3bb   :  { %840 = vxpose.xlu1.b32.cont [14/16] (narrow) %v722_v42, 8 }
 0x3bd   :  { %v677_v21 = vpop.f32.mrf.mxu2 }
 0x3be   :  { %809 = vxpose.xlu2.b32.cont [15/16] (narrow) %v677_v21, 8 }
 0x3c3   :  { %841 = vxpose.xlu1.b32.cont [15/16] (narrow) %v725_v44, 8 }
 0x3c5   :  { %v680_v30 = vpop.f32.mrf.mxu2 }
 0x3c6   :  { %810 = vxpose.xlu2.b32.end [16/16] (narrow) %v680_v30, 8 }
 0x3cb   :  { %842 = vxpose.xlu1.b32.end [16/16] (narrow) %v728_v25, 8 }
 0x3e7   :  { %v811_v48 = vpop.trf.xlu2 }
 0x3f7   :  { %v843_v49 = vpop.trf.xlu1 }
 0x420   :  { %v863_v50 = vpop.permute.xlu0 %862 }
 0x421   :  { %v865_v51 = vadd.f32 %v863_v50, %v747_v46  ;;  %v866_v52 = vadd.f32 %v863_v50, %v779_v47  ;;  %v867_v53 = vadd.f32 %v863_v50, %v811_v48  ;;  %v868_v54 = vadd.f32 %v863_v50, %v843_v49 }
 0x423   :  { %869 = vst [vmem:[#allocation2] sm:$0xff] %v865_v51 }
 0x424   :  { %870 = vst [vmem:[#allocation2 + $0x8] sm:$0xff] %v866_v52 }
 0x425   :  { %871 = vst [vmem:[#allocation2 + $0x10] sm:$0xff] %v867_v53 }
 0x426   :  { %872 = vst [vmem:[#allocation2 + $0x18] sm:$0xff] %v868_v54 }
 0x427   :  { %885 = dma.vmem_to_hbm [thread:$0]  %s878_s26, 512, %s880_s29, [#allocation3], %s1010_s30, %s1010_s30, %s1011_s6  }
 0x428   :  { %1003 = dma.done.wait [#allocation3], 512  }
 0x429   :  { %1004 = vsyncadd [#allocation3], 4294966784 }
 0x42a   :  { %890 = vsyncpa [#allocation3], 1 }

</bundles_post_ra>
